<compile_context>
chip_gen: v6e
topology: v6e:2x2x1
jax: 0.10.0
libtpu: 0.0.40
codegen_flags: <defaults>
</compile_context>

<pallas_src>
import math

import jax
import jax.numpy as jnp
from jax.experimental import pallas as pl
from jax.experimental.pallas import tpu as pltpu


# Total per-step VMEM budget (double-buffered x + out + pe tiles, padding
# included).  Comfortably inside the scoped-VMEM defaults of v5e (16 MiB),
# v6e (32 MiB) and v7x (32 MiB scoped / 64 MiB physical).
_TARGET_FOOTPRINT_BYTES = 12 * 1024 * 1024
# Below this, XLA's fused broadcast-add beats a standalone kernel launch.
_MIN_PALLAS_BYTES = 256 * 1024


def _build_pe(embd_dim: int, max_len: int, dtype=jnp.float32) -> jnp.ndarray:
    """Sinusoidal PE buffer, shape (max_len, 1, embd_dim) (matches the torch buffer)."""
    position = jnp.arange(max_len, dtype=jnp.float32)[:, None]                  # (max_len, 1)
    para = jnp.exp(jnp.arange(0, embd_dim, 2, dtype=jnp.float32)
                   * -(math.log(10000.0) / embd_dim))                           # (ceil(E/2),)
    angles = position * para                                                    # (max_len, ceil(E/2))
    pe = jnp.zeros((max_len, embd_dim), dtype=jnp.float32)
    pe = pe.at[:, 0::2].set(jnp.sin(angles))
    pe = pe.at[:, 1::2].set(jnp.cos(angles)[:, : embd_dim // 2])
    # pe.unsqueeze(0).transpose(0, 1) in torch -> (max_len, 1, embd_dim)
    return pe[:, None, :].astype(dtype)


def _pe_add_kernel(x_ref, pe_ref, o_ref):
    # x_ref:  (block_s, B, E) tile of the input
    # pe_ref: (block_s, 1, E) tile of the positional-encoding buffer.
    # The batch broadcast happens in VMEM (pe HBM traffic stays ~1/B of x's) and
    # the dtype cast is free VPU work hidden under the HBM-bound streaming add.
    o_ref[...] = x_ref[...] + pe_ref[...].astype(o_ref.dtype)


def _round_up(n: int, m: int) -> int:
    return -(-n // m) * m


def _snap_block_s(S: int, block_s: int) -> int:
    """Prefer a nearby multiple-of-8 block that divides S (no ragged masked
    trailing block), ideally with an even grid step count so the v7x 'parallel'
    axis shards evenly across both TensorCores."""
    lo = max(8, (block_s // 2 // 8) * 8)
    best_div = None
    for c in range(block_s, lo - 1, -8):
        if S % c == 0:
            if (S // c) % 2 == 0:
                return c                       # divisor AND even grid
            if best_div is None:
                best_div = c                   # divisor, odd grid
    return best_div if best_div is not None else block_s


def _pick_block_s(S: int, B: int, E: int, x_itemsize: int, pe_itemsize: int) -> int:
    b_pad = _round_up(B, 8)                    # (B, E) tile dims pad sublanes to 8
    # Double-buffered per-sequence-row footprint: x + out tiles (padded batch)
    # plus the pe tile (its size-1 middle dim pads each row to 8 sublanes).
    per_row = 2 * (2 * b_pad * E * x_itemsize + 8 * E * pe_itemsize)
    cap = max(1, _TARGET_FOOTPRINT_BYTES // per_row)
    # At least 4 grid steps (when S allows): a 2-TensorCore (v7x) parallel split
    # then still leaves >=2 steps per core for DMA/compute overlap.
    cap = min(cap, max(1, -(-S // 4)))
    block_s = max(1, min(S, cap))
    if block_s >= 8:
        block_s -= block_s % 8
        block_s = _snap_block_s(S, block_s)
    return block_s


def peaks_positional_encode(x: jnp.ndarray, pe: jnp.ndarray,
                            *, block_s: int | None = None,
                            force_pallas: bool = False) -> jnp.ndarray:
    """x: (S, B, E); pe: (max_len, 1, E). Returns x + pe[:S], dtype = x.dtype."""
    S, B, E = x.shape
    x_itemsize = jnp.dtype(x.dtype).itemsize
    pe_itemsize = jnp.dtype(pe.dtype).itemsize

    lane_dense = (E % 128 == 0)
    big_enough = x.size * x_itemsize >= _MIN_PALLAS_BYTES
    if not force_pallas and not (lane_dense and big_enough):
        # Tiny / lane-sparse inputs: let XLA fuse the broadcast add for free.
        return x + pe[:S].astype(x.dtype)

    if block_s is None:
        block_s = _pick_block_s(S, B, E, x_itemsize, pe_itemsize)
    block_s = max(1, min(block_s, S))
    grid = (pl.cdiv(S, block_s),)

    # Advisory cost: one add per element; stream x in + out, pe once (dense rows).
    cost = pl.CostEstimate(
        flops=S * B * E,
        transcendentals=0,
        bytes_accessed=2 * S * B * E * x_itemsize + S * E * pe_itemsize,
    )

    # Double-buffered VMEM footprint (with sublane padding); only set an explicit
    # limit when a caller-chosen block_s pushes past the v5e 16 MiB scoped default.
    x_tile_pad = block_s * _round_up(B, 8) * E * x_itemsize
    pe_tile_pad = block_s * 8 * E * pe_itemsize
    footprint = 2 * (2 * x_tile_pad + pe_tile_pad)
    cp_kwargs = dict(dimension_semantics=("parallel",))
    if footprint > 12 * 1024 * 1024:
        cp_kwargs["vmem_limit_bytes"] = int(footprint + (4 << 20))

    return pl.pallas_call(
        _pe_add_kernel,
        out_shape=jax.ShapeDtypeStruct((S, B, E), x.dtype),
        grid_spec=pltpu.PrefetchScalarGridSpec(
            num_scalar_prefetch=0,
            grid=grid,
            in_specs=[
                # Last two block dims equal the full array dims (B, E) -> always a
                # valid tiling; E is a multiple of 128 on this path (lane-dense).
                pl.BlockSpec((block_s, B, E), lambda i: (i, 0, 0)),
                # pe is windowed straight out of the full (max_len, 1, E) buffer;
                # no per-call slice/cast pass through HBM in the wrapper.
                pl.BlockSpec((block_s, 1, E), lambda i: (i, 0, 0)),
            ],
            out_specs=pl.BlockSpec((block_s, B, E), lambda i: (i, 0, 0)),
        ),
        compiler_params=pltpu.CompilerParams(**cp_kwargs),
        cost_estimate=cost,
    )(x, pe)


if __name__ == "__main__":
    key = jax.random.PRNGKey(0)
    k1, k2, k3, k4 = jax.random.split(key, 4)

    pe = _build_pe(128, max_len=1024)  # f32 buffer, like the torch module

    # 1) Pallas path, non-multiple-of-8 batch: (S, B, E) = (512, 4, 128) f32.
    #    block_s=128 -> 4-step even 'parallel' grid, no ragged trailing block.
    x = jax.random.normal(k1, (512, 4, 128), dtype=jnp.float32)
    out = jax.block_until_ready(peaks_positional_encode(x, pe))
    ref = x + pe[:512].astype(x.dtype)
    assert out.shape == x.shape and out.dtype == x.dtype
    assert jnp.allclose(out, ref, atol=1e-6), "pallas path (B=4) mismatch vs reference"

    # 2) Pallas path, sublane-aligned batch + bf16 input (in-kernel pe cast).
    x8 = jax.random.normal(k2, (256, 8, 128), dtype=jnp.bfloat16)
    out8 = jax.block_until_ready(peaks_positional_encode(x8, pe))
    ref8 = x8 + pe[:256].astype(jnp.bfloat16)
    assert out8.dtype == jnp.bfloat16
    assert jnp.allclose(out8.astype(jnp.float32), ref8.astype(jnp.float32),
                        atol=1e-2), "pallas path (bf16) mismatch vs reference"

    # 3) Ragged grid (S not a multiple of block_s) exercises Pallas block masking.
    x_r = jax.random.normal(k3, (100, 8, 128), dtype=jnp.float32)
    out_r = jax.block_until_ready(peaks_positional_encode(x_r, pe, force_pallas=True))
    assert jnp.allclose(out_r, x_r + pe[:100].astype(x_r.dtype),
                        atol=1e-6), "ragged pallas path mismatch vs reference"

    # 4) Tiny, lane-sparse module-like shape (8, 2, 32): dispatched to the fused
    #    XLA add (a standalone kernel loses on ~2 KiB of work); must still match.
    pe_small = _build_pe(32, max_len=64)
    x_small = jax.random.normal(k4, (8, 2, 32), dtype=jnp.float32)
    out_small = jax.block_until_ready(peaks_positional_encode(x_small, pe_small))
    assert jnp.allclose(out_small, x_small + pe_small[:8], atol=1e-6), "fallback path mismatch"

    print("KERNEL_OK")
</pallas_src>

<mosaic_0001>
module attributes {stable_mosaic.version = 11 : i64} {
  func.func @_pe_add_kernel(%arg0: i32, %arg1: memref<128x4x128xf32, #tpu.memory_space<vmem>>, %arg2: memref<128x1x128xf32, #tpu.memory_space<vmem>>, %arg3: memref<128x4x128xf32, #tpu.memory_space<vmem>>) attributes {dimension_semantics = [#tpu.dimension_semantics<parallel>], iteration_bounds = array<i64: 4>, scalar_prefetch = 0 : i64, scratch_operands = 0 : i64, tpu.core_type = #tpu.core_type<tc>, window_params = [{transform_indices = @transform_0, window_bounds = array<i64: 128, 4, 128>}, {transform_indices = @transform_1, window_bounds = array<i64: 128, 1, 128>}, {transform_indices = @transform_2, window_bounds = array<i64: 128, 4, 128>}]} {
    %c0 = arith.constant 0 : index
    %c0_0 = arith.constant 0 : index
    %c0_1 = arith.constant 0 : index
    %0 = vector.load %arg1[%c0, %c0_0, %c0_1] : memref<128x4x128xf32, #tpu.memory_space<vmem>>, vector<128x4x128xf32>
    %c0_2 = arith.constant 0 : index
    %c0_3 = arith.constant 0 : index
    %c0_4 = arith.constant 0 : index
    %1 = vector.load %arg2[%c0_2, %c0_3, %c0_4] : memref<128x1x128xf32, #tpu.memory_space<vmem>>, vector<128x1x128xf32>
    %2 = vector.broadcast %1 : vector<128x1x128xf32> to vector<128x4x128xf32>
    %3 = arith.addf %0, %2 : vector<128x4x128xf32>
    %c0_5 = arith.constant 0 : index
    %c0_6 = arith.constant 0 : index
    %c0_7 = arith.constant 0 : index
    %4 = vector.load %arg3[%c0_5, %c0_6, %c0_7] : memref<128x4x128xf32, #tpu.memory_space<vmem>>, vector<128x4x128xf32>
    tpu.vector_store %arg3[%c0_5, %c0_6, %c0_7], %3 {strides = array<i32>} : memref<128x4x128xf32, #tpu.memory_space<vmem>>, vector<128x4x128xf32>,
    return
  }
  func.func @transform_0(%arg0: i32) -> (i32, i32, i32) {
    %c0_i32 = arith.constant 0 : i32
    %c0_i32_0 = arith.constant 0 : i32
    %c0_i32_1 = arith.constant 0 : i32
    return %arg0, %c0_i32, %c0_i32_0 : i32, i32, i32
  }
  func.func @transform_1(%arg0: i32) -> (i32, i32, i32) {
    %c0_i32 = arith.constant 0 : i32
    %c0_i32_0 = arith.constant 0 : i32
    %c0_i32_1 = arith.constant 0 : i32
    return %arg0, %c0_i32, %c0_i32_0 : i32, i32, i32
  }
  func.func @transform_2(%arg0: i32) -> (i32, i32, i32) {
    %c0_i32 = arith.constant 0 : i32
    %c0_i32_0 = arith.constant 0 : i32
    %c0_i32_1 = arith.constant 0 : i32
    return %arg0, %c0_i32, %c0_i32_0 : i32, i32, i32
  }
}

</mosaic_0001>

<bundles_post_ra>
// kernel: tpu_custom_call.1
= control target key start
LH: loop header
LB: loop body
LE: loop exit
PB: predicated region body
PF: predicated region fallthrough
CT: control target
= control target key end

     0   :  { %7 = vsyncpa [#allocation3], 0  ;;  %s2553_s0 = inlined_call_operand.hbm [shape: f32[512,4,128], index: 0, kind: input, shape index: {}]   ;;  %s2554_s1 = inlined_call_operand.hbm [shape: f32[1024,1,128], index: 1, kind: input, shape index: {}]   ;;  %s2555_s2 = inlined_call_operand.hbm [shape: f32[512,4,128], index: 2, kind: output, shape index: {}]  }
   0x1   :  { %9 = vsyncpa [#allocation3 + $0x1], 0 }
   0x2   :  { %10 = vsyncpa [#allocation6], 0 }
   0x3   :  { %12 = vsyncpa [#allocation6 + $0x1], 0 }
   0x4   :  { %13 = vsyncpa [#allocation4], 0 }
   0x5   :  { %15 = vsyncpa [#allocation4 + $0x1], 0  ;;  %s1951_s9 = smov 0   ;;  %s1953_s10 = smov 0  }
   0x6   :  { %s1955_s11 = smov 0   ;;  %s1957_s12 = smov 0  }
   0x7 LB: > { %s1972_s13 = sadd.s32 4294967295, %s1925_s12   ;;  %s1595_s14 = sadd.s32 4294967294, %s1925_s12   ;;  %s1925_s12 = sphi %s1957_s12, %s2570_s12   ;;  %s1921_s11 = sphi %s1955_s11, %s2569_s11   ;;  %s1917_s10 = sphi %s1953_s10, %s2568_s10   ;;  %s1913_s9 = sphi %s1951_s9, %s2567_s9  }
   0x8   : > { %s1976_s15 = sadd.s32 1, %s1925_s12   ;;  %s28_s16 = sadd.s32 1, %s1921_s11 }
   0x9   : > { %s25_s17 = ssub.s32 %s1925_s12, %s1976_s15  ;;  %p35_p0 = scmp.ne.s32.totalorder %s1921_s11, %s1917_s10 }
   0xa   : > { %p26_p1 = scmp.eq.s32.totalorder %s25_s17, 0  ;;  %p36_p2 = scmp.eq.s32.totalorder %s1925_s12, 0 }
   0xb   : > { %p41_p3 = scmp.ne.s32.totalorder %s1917_s10, %s1913_s9  ;;  %p42_p4 = scmp.eq.s32.totalorder %s1972_s13, 0 }
   0xc   : > { %s1988_s18 = scalar_select %p26_p1, %s1921_s11, %s28_s16  }
   0xd   : > { %p1990_p5 = por %p36_p2, %p35_p0  ;;  %p1994_p6 = por %p42_p4, %p41_p3 }
   0xe   : > { %p91_p7 = scmp.eq.s32.totalorder %s1972_s13, 3  ;;  %p97_p8 = scmp.eq.s32.totalorder %s1595_s14, 3 }
   0xf   : > { %s2559_s20 = scalar_select %p1994_p6, 1, 0 }
  0x10   : > { %p1761_p9 = scmp.lt.s32.totalorder %s1925_s12, 4  ;;  %p2000_p10 = por %p91_p7, %p35_p0 }
  0x11   : > { %p2004_p11 = por %p97_p8, %p41_p3  ;;  %s2009_s23 = sand.u32 1, %s1921_s11  }
  0x12   : > { %s2560_s21 = scalar_select %p2000_p10, 1, 0 }
  0x13   : > { %s2561_s22 = scalar_select %p2004_p11, 1, 0 }
  0x14   : > { %s1741_s24 = sshll.u32 %s1925_s12, 13  ;;  %s1598_s25 = sshll.u32 %s2009_s23, 9 }
  0x15   : > { %s2016_s28 = scalar_lea.hbm %s2553_s0, %s1741_s24  ;;  %s121_s29 = scalar_lea.vmem [#allocation2], %s1598_s25 }
  0x16   : > { %s128_s30 = sshll.u32 %s121_s29, 4  ;;  %p2020_p12 = pnand %p1761_p9, %p1990_p5  ;;  %s2024_s30 = int_to_ptr.vmem [resolvable:$true] %s128_s30 }
  0x17   : > { %s118_s4 = scalar_lea.sflag [#allocation3], %s2009_s23  ;;  %s1801_s5 = scalar_lea.hbm %s2016_s28, 8192 }
  0x18   : > { %p1802_p13 = scmp.ne.s32.totalorder %s2016_s28, %s1801_s5  ;;  %p1803_p0 = pneg %p2020_p12 }
  0x19   : > { %s1806_s8 = scalar_lea.hbm %s2553_s0, 32768  ;;  %p1807_p3 = scmp.lt.s32.totalorder %s2016_s28, %s2553_s0 }
  0x1a   : > { %p1804_p1 = pnand %p1803_p0, %p1802_p13  ;;  %p1808_p4 = scmp.lt.s32.totalorder %s1806_s8, %s1801_s5 }
  0x1c   : > { %p1805_p2 = pneg %p1804_p1  ;;  %p1809_p5 = por %p1808_p4, %p1807_p3 }
  0x1e   : > { %p1810_p7 = pnand %p1809_p5, %p1805_p2 }
  0x20   : > { %1813 = shalt.err (!%p1810_p7)
}
  0x21   : > { %s1814_s17 = scalar_lea.vmem %s2024_s30, 8192  ;;  %s1927_s19 = smov [#allocation2]  }
  0x22   : > { %p1815_p8 = scmp.ne.s32.totalorder %s2024_s30, %s1814_s17  ;;  %s1819_s24 = sshll.u32 %s1927_s19, 4  ;;  %s1820_s24 = int_to_ptr.vmem [resolvable:$false] %s1819_s24 }
  0x23   : > { %s1821_s25 = scalar_lea.vmem %s1820_s24, 16384  ;;  %p1822_p1 = scmp.lt.s32.totalorder %s2024_s30, %s1820_s24 }
  0x24   : > { %p1817_p9 = pnand %p1815_p8, %p1803_p0  ;;  %p1823_p11 = scmp.lt.s32.totalorder %s1821_s25, %s1814_s17 }
  0x26   : > { %p1818_p13 = pneg %p1817_p9  ;;  %p1824_p10 = por %p1823_p11, %p1822_p1 }
  0x28   : > { %p1825_p3 = pnand %p1824_p10, %p1818_p13 }
  0x2a   : > { %1828 = shalt.err (!%p1825_p3)
}
  0x2b   : > { %s1928_s26 = smov 64   ;;  %s1929_s27 = smov 4  }
  0x2c   : > { %1753 = dma.hbm_to_vmem [thread:$0]  (!%p2020_p12), %s2016_s28, 8192, %s2024_s30, %s118_s4, %s1928_s26, %s1928_s26, %s1929_s27  }
  0x2d   : > { %p1604_p2 = scmp.ge.s32.totalorder %s1925_s12, 1  ;;  %p157_p4 = scmp.lt.s32.totalorder %s1925_s12, 5 }
  0x2e   : > { %s1601_s29 = sshll.u32 %s2009_s23, 7  ;;  %s1742_s6 = sshll.u32 %s1925_s12, 11 }
  0x2f   : > { %p2056_p10 = pnand %p1604_p2, %p157_p4  ;;  %s142_s7 = scalar_lea.vmem [#allocation5], %s1601_s29 }
  0x30   : > { %s149_s8 = sshll.u32 %s142_s7, 4  ;;  %s2064_s17 = scalar_lea.hbm %s2554_s1, %s1742_s6  ;;  %s2066_s8 = int_to_ptr.vmem [resolvable:$true] %s149_s8 }
  0x31   : > { %s139_s28 = scalar_lea.sflag [#allocation6], %s2009_s23  ;;  %s1829_s30 = scalar_lea.hbm %s2064_s17, 2048 }
  0x32   : > { %p1830_p11 = scmp.ne.s32.totalorder %s2064_s17, %s1829_s30  ;;  %s1834_s24 = scalar_lea.hbm %s2554_s1, 16384 }
  0x33   : > { %p1835_p8 = scmp.lt.s32.totalorder %s2064_s17, %s2554_s1  ;;  %p1836_p9 = scmp.lt.s32.totalorder %s1834_s24, %s1829_s30 }
  0x34   : > { %p1832_p5 = pnand %p1830_p11, %p1803_p0 }
  0x35   : > { %p1837_p13 = por %p1836_p9, %p1835_p8 }
  0x36   : > { %p1833_p7 = pneg %p1832_p5 }
  0x38   : > { %p1838_p1 = pnand %p1837_p13, %p1833_p7 }
  0x3a   : > { %1841 = shalt.err (!%p1838_p1)
}
  0x3b   : > { %s1842_s27 = scalar_lea.vmem %s2066_s8, 2048  ;;  %s1930_s29 = smov [#allocation5]  }
  0x3c   : > { %p1843_p3 = scmp.ne.s32.totalorder %s2066_s8, %s1842_s27  ;;  %s1847_s6 = sshll.u32 %s1930_s29, 4  ;;  %s1848_s6 = int_to_ptr.vmem [resolvable:$false] %s1847_s6 }
  0x3d   : > { %s1849_s7 = scalar_lea.vmem %s1848_s6, 4096  ;;  %p1850_p11 = scmp.lt.s32.totalorder %s2066_s8, %s1848_s6 }
  0x3e   : > { %p1845_p2 = pnand %p1843_p3, %p1803_p0  ;;  %p1851_p5 = scmp.lt.s32.totalorder %s1849_s7, %s1842_s27 }
  0x40   : > { %p1846_p4 = pneg %p1845_p2  ;;  %p1852_p6 = por %p1851_p5, %p1850_p11 }
  0x42   : > { %p1853_p8 = pnand %p1852_p6, %p1846_p4 }
  0x44   : > { %1856 = shalt.err (!%p1853_p8)
}
  0x45   : > { %s1931_s14 = smov 16   ;;  %s1932_s16 = smov 1  }
  0x46   : > { %1756 = dma.hbm_to_vmem [thread:$0]  (!%p2020_p12), %s2064_s17, 2048, %s2066_s8, %s139_s28, %s1931_s14, %s1931_s14, %s1932_s16  }
  0x47   : > { %161 = sbr.rel (%p2056_p10) target bundleno = 230 (0xe6), region = 28  ;;  %s2096_s30 = sand.u32 (!%p2056_p10), 1, %s1917_s10  }
  0x48   : > { %s1605_s4 = sshll.u32 (!%p2056_p10), %s2096_s30, 9  ;;  %s164_s19 = scalar_lea.sflag (!%p2056_p10), [#allocation3], %s2096_s30 }
  0x49   : > { %s2100_s24 = scalar_lea.vmem (!%p2056_p10), [#allocation2], %s1605_s4  ;;  %p2564_p6 = scmp.ne.s32.totalorder (!%p2056_p10), %s2559_s20, 0 }
  0x4c   : > { %1900 = dma.done.wait (%p2564_p6), %s164_s19, 8192  }
  0x4d   : > { %1902 = vsyncadd (%p2564_p6), %s164_s19, 4294959104  ;;  %s1606_s23 = sshll.u32 %s2096_s30, 7  ;;  %s173_s3 = scalar_lea.sflag [#allocation6], %s2096_s30 }
  0x4e   : > { %s2108_s5 = scalar_lea.vmem [#allocation5], %s1606_s23 }
  0x4f   : > { %1904 = dma.done.wait (%p2564_p6), %s173_s3, 2048  }
  0x50   : > { %1906 = vsyncadd (%p2564_p6), %s173_s3, 4294965248  ;;  %s1743_s8 = sshll.u32 %s1972_s13, 13  ;;  %s2115_s17 = scalar_lea.vmem [#allocation7], %s1605_s4  ;;  %v205_v0 = vld [vmem:[%s2100_s24] sm:$0xf] }
  0x51   : > { %s1499_s28 = sshll.u32 %s2115_s17, 4  ;;  %v1608_v1 = vld [vmem:[%s2108_s5] ss:$0 sm:$0xff]  ;;  %v206_v2 = vld [vmem:[%s2100_s24 + $0x4] sm:$0xf]  ;;  %s2503_s26 = scalar_lea.hbm %s2555_s2, %s1743_s8  ;;  %s2507_s28 = int_to_ptr.vmem [resolvable:$true] %s1499_s28 }
  0x52   : > { %v1229_v3 = vadd.f32 %v1608_v1, %v205_v0  ;;  %v1609_v4 = vld [vmem:[%s2108_s5 + $0x1] ss:$0 sm:$0xff]  ;;  %v207_v5 = vld [vmem:[%s2100_s24 + $0x8] sm:$0xf]  ;;  %v1610_v6 = vld [vmem:[%s2108_s5 + $0x2] ss:$0 sm:$0xff] }
  0x53   : > { %v1230_v7 = vadd.f32 %v1609_v4, %v206_v2  ;;  %v1231_v8 = vadd.f32 %v1610_v6, %v207_v5  ;;  %v208_v9 = vld [vmem:[%s2100_s24 + $0xc] sm:$0xf]  ;;  %v1611_v10 = vld [vmem:[%s2108_s5 + $0x3] ss:$0 sm:$0xff]  ;;  %v209_v11 = vld [vmem:[%s2100_s24 + $0x10] sm:$0xf] }
  0x54   : > { %1357 = vst [vmem:[%s2115_s17] sm:$0xf] %v1229_v3  ;;  %v1232_v12 = vadd.f32 %v1611_v10, %v208_v9  ;;  %v1612_v13 = vld [vmem:[%s2108_s5 + $0x4] ss:$0 sm:$0xff]  ;;  %v210_v14 = vld [vmem:[%s2100_s24 + $0x14] sm:$0xf]  ;;  %s1486_s27 = scalar_lea.sflag [#allocation4], %s2096_s30 }
  0x55   : > { %v1613_v15 = vld [vmem:[%s2108_s5 + $0x5] ss:$0 sm:$0xff]  ;;  %1358 = vst [vmem:[%s2115_s17 + $0x4] sm:$0xf] %v1230_v7  ;;  %1359 = vst [vmem:[%s2115_s17 + $0x8] sm:$0xf] %v1231_v8  ;;  %v1233_v16 = vadd.f32 %v1612_v13, %v209_v11 }
  0x56   : > { %v1234_v17 = vadd.f32 %v1613_v15, %v210_v14  ;;  %v211_v18 = vld [vmem:[%s2100_s24 + $0x18] sm:$0xf]  ;;  %v1614_v19 = vld [vmem:[%s2108_s5 + $0x6] ss:$0 sm:$0xff]  ;;  %v212_v20 = vld [vmem:[%s2100_s24 + $0x1c] sm:$0xf] }
  0x57   : > { %1360 = vst [vmem:[%s2115_s17 + $0xc] sm:$0xf] %v1232_v12  ;;  %v1235_v21 = vadd.f32 %v1614_v19, %v211_v18  ;;  %v1615_v22 = vld [vmem:[%s2108_s5 + $0x7] ss:$0 sm:$0xff]  ;;  %v213_v23 = vld [vmem:[%s2100_s24 + $0x20] sm:$0xf] }
  0x58   : > { %v1616_v24 = vld [vmem:[%s2108_s5 + $0x8] ss:$0 sm:$0xff]  ;;  %1361 = vst [vmem:[%s2115_s17 + $0x10] sm:$0xf] %v1233_v16  ;;  %1362 = vst [vmem:[%s2115_s17 + $0x14] sm:$0xf] %v1234_v17  ;;  %v1236_v25 = vadd.f32 %v1615_v22, %v212_v20 }
  0x59   : > { %v1237_v26 = vadd.f32 %v1616_v24, %v213_v23  ;;  %v214_v27 = vld [vmem:[%s2100_s24 + $0x24] sm:$0xf]  ;;  %v1617_v28 = vld [vmem:[%s2108_s5 + $0x9] ss:$0 sm:$0xff]  ;;  %1363 = vst [vmem:[%s2115_s17 + $0x18] sm:$0xf] %v1235_v21 }
  0x5a   : > { %v215_v29 = vld [vmem:[%s2100_s24 + $0x28] sm:$0xf]  ;;  %v1238_v30 = vadd.f32 %v1617_v28, %v214_v27  ;;  %v216_v32 = vld [vmem:[%s2100_s24 + $0x2c] sm:$0xf]  ;;  %1364 = vst [vmem:[%s2115_s17 + $0x1c] sm:$0xf] %v1236_v25 }
  0x5b   : > { %v1618_v31 = vld [vmem:[%s2108_s5 + $0xa] ss:$0 sm:$0xff]  ;;  %v1619_v33 = vld [vmem:[%s2108_s5 + $0xb] ss:$0 sm:$0xff]  ;;  %1365 = vst [vmem:[%s2115_s17 + $0x20] sm:$0xf] %v1237_v26 }
  0x5c   : > { %v1239_v34 = vadd.f32 %v1618_v31, %v215_v29  ;;  %v1240_v35 = vadd.f32 %v1619_v33, %v216_v32  ;;  %v217_v36 = vld [vmem:[%s2100_s24 + $0x30] sm:$0xf]  ;;  %v1620_v37 = vld [vmem:[%s2108_s5 + $0xc] ss:$0 sm:$0xff]  ;;  %v218_v38 = vld [vmem:[%s2100_s24 + $0x34] sm:$0xf] }
  0x5d   : > { %1366 = vst [vmem:[%s2115_s17 + $0x24] sm:$0xf] %v1238_v30  ;;  %v1241_v39 = vadd.f32 %v1620_v37, %v217_v36  ;;  %v1621_v40 = vld [vmem:[%s2108_s5 + $0xd] ss:$0 sm:$0xff]  ;;  %v219_v41 = vld [vmem:[%s2100_s24 + $0x38] sm:$0xf] }
  0x5e   : > { %v1622_v42 = vld [vmem:[%s2108_s5 + $0xe] ss:$0 sm:$0xff]  ;;  %1367 = vst [vmem:[%s2115_s17 + $0x28] sm:$0xf] %v1239_v34  ;;  %1368 = vst [vmem:[%s2115_s17 + $0x2c] sm:$0xf] %v1240_v35  ;;  %v1242_v43 = vadd.f32 %v1621_v40, %v218_v38 }
  0x5f   : > { %v1243_v44 = vadd.f32 %v1622_v42, %v219_v41  ;;  %v220_v45 = vld [vmem:[%s2100_s24 + $0x3c] sm:$0xf]  ;;  %v1623_v46 = vld [vmem:[%s2108_s5 + $0xf] ss:$0 sm:$0xff]  ;;  %v221_v47 = vld [vmem:[%s2100_s24 + $0x40] sm:$0xf] }
  0x60   : > { %1369 = vst [vmem:[%s2115_s17 + $0x30] sm:$0xf] %v1241_v39  ;;  %v1244_v48 = vadd.f32 %v1623_v46, %v220_v45  ;;  %v1624_v49 = vld [vmem:[%s2108_s5 + $0x10] ss:$0 sm:$0xff]  ;;  %v222_v50 = vld [vmem:[%s2100_s24 + $0x44] sm:$0xf] }
  0x61   : > { %v1625_v51 = vld [vmem:[%s2108_s5 + $0x11] ss:$0 sm:$0xff]  ;;  %1370 = vst [vmem:[%s2115_s17 + $0x34] sm:$0xf] %v1242_v43  ;;  %1371 = vst [vmem:[%s2115_s17 + $0x38] sm:$0xf] %v1243_v44  ;;  %v1245_v52 = vadd.f32 %v1624_v49, %v221_v47 }
  0x62   : > { %v1246_v53 = vadd.f32 %v1625_v51, %v222_v50  ;;  %v223_v54 = vld [vmem:[%s2100_s24 + $0x48] sm:$0xf]  ;;  %v1626_v55 = vld [vmem:[%s2108_s5 + $0x12] ss:$0 sm:$0xff]  ;;  %v224_v56 = vld [vmem:[%s2100_s24 + $0x4c] sm:$0xf] }
  0x63   : > { %1372 = vst [vmem:[%s2115_s17 + $0x3c] sm:$0xf] %v1244_v48  ;;  %v1247_v57 = vadd.f32 %v1626_v55, %v223_v54  ;;  %v1627_v58 = vld [vmem:[%s2108_s5 + $0x13] ss:$0 sm:$0xff]  ;;  %v1628_v60 = vld [vmem:[%s2108_s5 + $0x14] ss:$0 sm:$0xff] }
  0x64   : > { %v225_v59 = vld [vmem:[%s2100_s24 + $0x50] sm:$0xf]  ;;  %1373 = vst [vmem:[%s2115_s17 + $0x40] sm:$0xf] %v1245_v52  ;;  %1374 = vst [vmem:[%s2115_s17 + $0x44] sm:$0xf] %v1246_v53  ;;  %v1248_v61 = vadd.f32 %v1627_v58, %v224_v56 }
  0x65   : > { %v1249_v62 = vadd.f32 %v1628_v60, %v225_v59  ;;  %v226_v63 = vld [vmem:[%s2100_s24 + $0x54] sm:$0xf]  ;;  %v227_v1 = vld [vmem:[%s2100_s24 + $0x58] sm:$0xf]  ;;  %1375 = vst [vmem:[%s2115_s17 + $0x48] sm:$0xf] %v1247_v57 }
  0x66   : > { %v1629_v0 = vld [vmem:[%s2108_s5 + $0x15] ss:$0 sm:$0xff]  ;;  %v1630_v3 = vld [vmem:[%s2108_s5 + $0x16] ss:$0 sm:$0xff]  ;;  %v228_v4 = vld [vmem:[%s2100_s24 + $0x5c] sm:$0xf] }
  0x67   : > { %v1250_v2 = vadd.f32 %v1629_v0, %v226_v63  ;;  %v1631_v5 = vld [vmem:[%s2108_s5 + $0x17] ss:$0 sm:$0xff]  ;;  %1376 = vst [vmem:[%s2115_s17 + $0x4c] sm:$0xf] %v1248_v61  ;;  %1377 = vst [vmem:[%s2115_s17 + $0x50] sm:$0xf] %v1249_v62  ;;  %v1251_v6 = vadd.f32 %v1630_v3, %v227_v1 }
  0x68   : > { %v1252_v7 = vadd.f32 %v1631_v5, %v228_v4  ;;  %v229_v8 = vld [vmem:[%s2100_s24 + $0x60] sm:$0xf]  ;;  %v1632_v9 = vld [vmem:[%s2108_s5 + $0x18] ss:$0 sm:$0xff]  ;;  %v230_v10 = vld [vmem:[%s2100_s24 + $0x64] sm:$0xf] }
  0x69   : > { %1378 = vst [vmem:[%s2115_s17 + $0x54] sm:$0xf] %v1250_v2  ;;  %v1253_v11 = vadd.f32 %v1632_v9, %v229_v8  ;;  %v1633_v12 = vld [vmem:[%s2108_s5 + $0x19] ss:$0 sm:$0xff]  ;;  %v231_v13 = vld [vmem:[%s2100_s24 + $0x68] sm:$0xf] }
  0x6a   : > { %v1634_v14 = vld [vmem:[%s2108_s5 + $0x1a] ss:$0 sm:$0xff]  ;;  %1379 = vst [vmem:[%s2115_s17 + $0x58] sm:$0xf] %v1251_v6  ;;  %1380 = vst [vmem:[%s2115_s17 + $0x5c] sm:$0xf] %v1252_v7  ;;  %v1254_v15 = vadd.f32 %v1633_v12, %v230_v10 }
  0x6b   : > { %v1255_v16 = vadd.f32 %v1634_v14, %v231_v13  ;;  %v232_v17 = vld [vmem:[%s2100_s24 + $0x6c] sm:$0xf]  ;;  %v1635_v18 = vld [vmem:[%s2108_s5 + $0x1b] ss:$0 sm:$0xff]  ;;  %v233_v19 = vld [vmem:[%s2100_s24 + $0x70] sm:$0xf] }
  0x6c   : > { %1381 = vst [vmem:[%s2115_s17 + $0x60] sm:$0xf] %v1253_v11  ;;  %v1256_v20 = vadd.f32 %v1635_v18, %v232_v17  ;;  %v1636_v21 = vld [vmem:[%s2108_s5 + $0x1c] ss:$0 sm:$0xff]  ;;  %v234_v22 = vld [vmem:[%s2100_s24 + $0x74] sm:$0xf] }
  0x6d   : > { %v1637_v23 = vld [vmem:[%s2108_s5 + $0x1d] ss:$0 sm:$0xff]  ;;  %1382 = vst [vmem:[%s2115_s17 + $0x64] sm:$0xf] %v1254_v15  ;;  %1383 = vst [vmem:[%s2115_s17 + $0x68] sm:$0xf] %v1255_v16  ;;  %v1257_v24 = vadd.f32 %v1636_v21, %v233_v19 }
  0x6e   : > { %v1258_v25 = vadd.f32 %v1637_v23, %v234_v22  ;;  %v235_v26 = vld [vmem:[%s2100_s24 + $0x78] sm:$0xf]  ;;  %v1638_v27 = vld [vmem:[%s2108_s5 + $0x1e] ss:$0 sm:$0xff]  ;;  %1384 = vst [vmem:[%s2115_s17 + $0x6c] sm:$0xf] %v1256_v20 }
  0x6f   : > { %v236_v28 = vld [vmem:[%s2100_s24 + $0x7c] sm:$0xf]  ;;  %v1259_v29 = vadd.f32 %v1638_v27, %v235_v26  ;;  %v237_v31 = vld [vmem:[%s2100_s24 + $0x80] sm:$0xf]  ;;  %1385 = vst [vmem:[%s2115_s17 + $0x70] sm:$0xf] %v1257_v24 }
  0x70   : > { %v1639_v30 = vld [vmem:[%s2108_s5 + $0x1f] ss:$0 sm:$0xff]  ;;  %v1640_v32 = vld [vmem:[%s2108_s5 + $0x20] ss:$0 sm:$0xff]  ;;  %1386 = vst [vmem:[%s2115_s17 + $0x74] sm:$0xf] %v1258_v25 }
  0x71   : > { %v1260_v33 = vadd.f32 %v1639_v30, %v236_v28  ;;  %v1261_v34 = vadd.f32 %v1640_v32, %v237_v31  ;;  %v238_v35 = vld [vmem:[%s2100_s24 + $0x84] sm:$0xf]  ;;  %v1641_v36 = vld [vmem:[%s2108_s5 + $0x21] ss:$0 sm:$0xff]  ;;  %v239_v37 = vld [vmem:[%s2100_s24 + $0x88] sm:$0xf] }
  0x72   : > { %1387 = vst [vmem:[%s2115_s17 + $0x78] sm:$0xf] %v1259_v29  ;;  %v1262_v38 = vadd.f32 %v1641_v36, %v238_v35  ;;  %v1642_v39 = vld [vmem:[%s2108_s5 + $0x22] ss:$0 sm:$0xff]  ;;  %v240_v40 = vld [vmem:[%s2100_s24 + $0x8c] sm:$0xf] }
  0x73   : > { %v1643_v41 = vld [vmem:[%s2108_s5 + $0x23] ss:$0 sm:$0xff]  ;;  %1388 = vst [vmem:[%s2115_s17 + $0x7c] sm:$0xf] %v1260_v33  ;;  %1389 = vst [vmem:[%s2115_s17 + $0x80] sm:$0xf] %v1261_v34  ;;  %v1263_v42 = vadd.f32 %v1642_v39, %v239_v37 }
  0x74   : > { %v1264_v43 = vadd.f32 %v1643_v41, %v240_v40  ;;  %v241_v44 = vld [vmem:[%s2100_s24 + $0x90] sm:$0xf]  ;;  %v1644_v45 = vld [vmem:[%s2108_s5 + $0x24] ss:$0 sm:$0xff]  ;;  %v242_v46 = vld [vmem:[%s2100_s24 + $0x94] sm:$0xf] }
  0x75   : > { %1390 = vst [vmem:[%s2115_s17 + $0x84] sm:$0xf] %v1262_v38  ;;  %v1265_v47 = vadd.f32 %v1644_v45, %v241_v44  ;;  %v1645_v48 = vld [vmem:[%s2108_s5 + $0x25] ss:$0 sm:$0xff]  ;;  %v243_v49 = vld [vmem:[%s2100_s24 + $0x98] sm:$0xf] }
  0x76   : > { %v1646_v50 = vld [vmem:[%s2108_s5 + $0x26] ss:$0 sm:$0xff]  ;;  %1391 = vst [vmem:[%s2115_s17 + $0x88] sm:$0xf] %v1263_v42  ;;  %1392 = vst [vmem:[%s2115_s17 + $0x8c] sm:$0xf] %v1264_v43  ;;  %v1266_v51 = vadd.f32 %v1645_v48, %v242_v46 }
  0x77   : > { %v1267_v52 = vadd.f32 %v1646_v50, %v243_v49  ;;  %v244_v53 = vld [vmem:[%s2100_s24 + $0x9c] sm:$0xf]  ;;  %v1647_v54 = vld [vmem:[%s2108_s5 + $0x27] ss:$0 sm:$0xff]  ;;  %v245_v55 = vld [vmem:[%s2100_s24 + $0xa0] sm:$0xf] }
  0x78   : > { %1393 = vst [vmem:[%s2115_s17 + $0x90] sm:$0xf] %v1265_v47  ;;  %v1268_v56 = vadd.f32 %v1647_v54, %v244_v53  ;;  %v1648_v57 = vld [vmem:[%s2108_s5 + $0x28] ss:$0 sm:$0xff]  ;;  %v246_v58 = vld [vmem:[%s2100_s24 + $0xa4] sm:$0xf] }
  0x79   : > { %v1649_v59 = vld [vmem:[%s2108_s5 + $0x29] ss:$0 sm:$0xff]  ;;  %1394 = vst [vmem:[%s2115_s17 + $0x94] sm:$0xf] %v1266_v51  ;;  %1395 = vst [vmem:[%s2115_s17 + $0x98] sm:$0xf] %v1267_v52  ;;  %v1269_v60 = vadd.f32 %v1648_v57, %v245_v55 }
  0x7a   : > { %v1270_v61 = vadd.f32 %v1649_v59, %v246_v58  ;;  %v247_v62 = vld [vmem:[%s2100_s24 + $0xa8] sm:$0xf]  ;;  %v248_v0 = vld [vmem:[%s2100_s24 + $0xac] sm:$0xf]  ;;  %1396 = vst [vmem:[%s2115_s17 + $0x9c] sm:$0xf] %v1268_v56 }
  0x7b   : > { %v1650_v63 = vld [vmem:[%s2108_s5 + $0x2a] ss:$0 sm:$0xff]  ;;  %v1651_v2 = vld [vmem:[%s2108_s5 + $0x2b] ss:$0 sm:$0xff]  ;;  %v249_v3 = vld [vmem:[%s2100_s24 + $0xb0] sm:$0xf] }
  0x7c   : > { %v1271_v1 = vadd.f32 %v1650_v63, %v247_v62  ;;  %v1652_v4 = vld [vmem:[%s2108_s5 + $0x2c] ss:$0 sm:$0xff]  ;;  %1397 = vst [vmem:[%s2115_s17 + $0xa0] sm:$0xf] %v1269_v60  ;;  %1398 = vst [vmem:[%s2115_s17 + $0xa4] sm:$0xf] %v1270_v61  ;;  %v1272_v5 = vadd.f32 %v1651_v2, %v248_v0 }
  0x7d   : > { %v1273_v6 = vadd.f32 %v1652_v4, %v249_v3  ;;  %v250_v7 = vld [vmem:[%s2100_s24 + $0xb4] sm:$0xf]  ;;  %v1653_v8 = vld [vmem:[%s2108_s5 + $0x2d] ss:$0 sm:$0xff]  ;;  %v251_v9 = vld [vmem:[%s2100_s24 + $0xb8] sm:$0xf] }
  0x7e   : > { %1399 = vst [vmem:[%s2115_s17 + $0xa8] sm:$0xf] %v1271_v1  ;;  %v1274_v10 = vadd.f32 %v1653_v8, %v250_v7  ;;  %v1654_v11 = vld [vmem:[%s2108_s5 + $0x2e] ss:$0 sm:$0xff]  ;;  %v252_v12 = vld [vmem:[%s2100_s24 + $0xbc] sm:$0xf] }
  0x7f   : > { %v1655_v13 = vld [vmem:[%s2108_s5 + $0x2f] ss:$0 sm:$0xff]  ;;  %1400 = vst [vmem:[%s2115_s17 + $0xac] sm:$0xf] %v1272_v5  ;;  %1401 = vst [vmem:[%s2115_s17 + $0xb0] sm:$0xf] %v1273_v6  ;;  %v1275_v14 = vadd.f32 %v1654_v11, %v251_v9 }
  0x80   : > { %v1276_v15 = vadd.f32 %v1655_v13, %v252_v12  ;;  %v253_v16 = vld [vmem:[%s2100_s24 + $0xc0] sm:$0xf]  ;;  %v1656_v17 = vld [vmem:[%s2108_s5 + $0x30] ss:$0 sm:$0xff]  ;;  %v254_v18 = vld [vmem:[%s2100_s24 + $0xc4] sm:$0xf] }
  0x81   : > { %1402 = vst [vmem:[%s2115_s17 + $0xb4] sm:$0xf] %v1274_v10  ;;  %v1277_v19 = vadd.f32 %v1656_v17, %v253_v16  ;;  %v1657_v20 = vld [vmem:[%s2108_s5 + $0x31] ss:$0 sm:$0xff]  ;;  %v255_v21 = vld [vmem:[%s2100_s24 + $0xc8] sm:$0xf] }
  0x82   : > { %v1658_v22 = vld [vmem:[%s2108_s5 + $0x32] ss:$0 sm:$0xff]  ;;  %1403 = vst [vmem:[%s2115_s17 + $0xb8] sm:$0xf] %v1275_v14  ;;  %1404 = vst [vmem:[%s2115_s17 + $0xbc] sm:$0xf] %v1276_v15  ;;  %v1278_v23 = vadd.f32 %v1657_v20, %v254_v18 }
  0x83   : > { %v1279_v24 = vadd.f32 %v1658_v22, %v255_v21  ;;  %v256_v25 = vld [vmem:[%s2100_s24 + $0xcc] sm:$0xf]  ;;  %v1659_v26 = vld [vmem:[%s2108_s5 + $0x33] ss:$0 sm:$0xff]  ;;  %1405 = vst [vmem:[%s2115_s17 + $0xc0] sm:$0xf] %v1277_v19 }
  0x84   : > { %v257_v27 = vld [vmem:[%s2100_s24 + $0xd0] sm:$0xf]  ;;  %v1280_v28 = vadd.f32 %v1659_v26, %v256_v25  ;;  %v1660_v29 = vld [vmem:[%s2108_s5 + $0x34] ss:$0 sm:$0xff]  ;;  %v1661_v31 = vld [vmem:[%s2108_s5 + $0x35] ss:$0 sm:$0xff] }
  0x85   : > { %v258_v30 = vld [vmem:[%s2100_s24 + $0xd4] sm:$0xf]  ;;  %1406 = vst [vmem:[%s2115_s17 + $0xc4] sm:$0xf] %v1278_v23  ;;  %1407 = vst [vmem:[%s2115_s17 + $0xc8] sm:$0xf] %v1279_v24  ;;  %v1281_v32 = vadd.f32 %v1660_v29, %v257_v27 }
  0x86   : > { %v1282_v33 = vadd.f32 %v1661_v31, %v258_v30  ;;  %v259_v34 = vld [vmem:[%s2100_s24 + $0xd8] sm:$0xf]  ;;  %v1662_v35 = vld [vmem:[%s2108_s5 + $0x36] ss:$0 sm:$0xff]  ;;  %v260_v36 = vld [vmem:[%s2100_s24 + $0xdc] sm:$0xf] }
  0x87   : > { %1408 = vst [vmem:[%s2115_s17 + $0xcc] sm:$0xf] %v1280_v28  ;;  %v1283_v37 = vadd.f32 %v1662_v35, %v259_v34  ;;  %v1663_v38 = vld [vmem:[%s2108_s5 + $0x37] ss:$0 sm:$0xff]  ;;  %v261_v39 = vld [vmem:[%s2100_s24 + $0xe0] sm:$0xf] }
  0x88   : > { %v1664_v40 = vld [vmem:[%s2108_s5 + $0x38] ss:$0 sm:$0xff]  ;;  %1409 = vst [vmem:[%s2115_s17 + $0xd0] sm:$0xf] %v1281_v32  ;;  %1410 = vst [vmem:[%s2115_s17 + $0xd4] sm:$0xf] %v1282_v33  ;;  %v1284_v41 = vadd.f32 %v1663_v38, %v260_v36 }
  0x89   : > { %v1285_v42 = vadd.f32 %v1664_v40, %v261_v39  ;;  %v262_v43 = vld [vmem:[%s2100_s24 + $0xe4] sm:$0xf]  ;;  %v1665_v44 = vld [vmem:[%s2108_s5 + $0x39] ss:$0 sm:$0xff]  ;;  %v263_v45 = vld [vmem:[%s2100_s24 + $0xe8] sm:$0xf] }
  0x8a   : > { %1411 = vst [vmem:[%s2115_s17 + $0xd8] sm:$0xf] %v1283_v37  ;;  %v1286_v46 = vadd.f32 %v1665_v44, %v262_v43  ;;  %v1666_v47 = vld [vmem:[%s2108_s5 + $0x3a] ss:$0 sm:$0xff]  ;;  %v264_v48 = vld [vmem:[%s2100_s24 + $0xec] sm:$0xf] }
  0x8b   : > { %v1667_v49 = vld [vmem:[%s2108_s5 + $0x3b] ss:$0 sm:$0xff]  ;;  %1412 = vst [vmem:[%s2115_s17 + $0xdc] sm:$0xf] %v1284_v41  ;;  %1413 = vst [vmem:[%s2115_s17 + $0xe0] sm:$0xf] %v1285_v42  ;;  %v1287_v50 = vadd.f32 %v1666_v47, %v263_v45 }
  0x8c   : > { %v1288_v51 = vadd.f32 %v1667_v49, %v264_v48  ;;  %v265_v52 = vld [vmem:[%s2100_s24 + $0xf0] sm:$0xf]  ;;  %v1668_v53 = vld [vmem:[%s2108_s5 + $0x3c] ss:$0 sm:$0xff]  ;;  %v266_v54 = vld [vmem:[%s2100_s24 + $0xf4] sm:$0xf] }
  0x8d   : > { %1414 = vst [vmem:[%s2115_s17 + $0xe4] sm:$0xf] %v1286_v46  ;;  %v1289_v55 = vadd.f32 %v1668_v53, %v265_v52  ;;  %v1669_v56 = vld [vmem:[%s2108_s5 + $0x3d] ss:$0 sm:$0xff]  ;;  %v267_v57 = vld [vmem:[%s2100_s24 + $0xf8] sm:$0xf] }
  0x8e   : > { %v1670_v58 = vld [vmem:[%s2108_s5 + $0x3e] ss:$0 sm:$0xff]  ;;  %1415 = vst [vmem:[%s2115_s17 + $0xe8] sm:$0xf] %v1287_v50  ;;  %1416 = vst [vmem:[%s2115_s17 + $0xec] sm:$0xf] %v1288_v51  ;;  %v1290_v59 = vadd.f32 %v1669_v56, %v266_v54 }
  0x8f   : > { %v1291_v60 = vadd.f32 %v1670_v58, %v267_v57  ;;  %v268_v61 = vld [vmem:[%s2100_s24 + $0xfc] sm:$0xf]  ;;  %v269_v63 = vld [vmem:[%s2100_s24 + $0x100] sm:$0xf]  ;;  %1417 = vst [vmem:[%s2115_s17 + $0xf0] sm:$0xf] %v1289_v55 }
  0x90   : > { %v1671_v62 = vld [vmem:[%s2108_s5 + $0x3f] ss:$0 sm:$0xff]  ;;  %v1672_v1 = vld [vmem:[%s2108_s5 + $0x40] ss:$0 sm:$0xff]  ;;  %v270_v2 = vld [vmem:[%s2100_s24 + $0x104] sm:$0xf] }
  0x91   : > { %v1292_v0 = vadd.f32 %v1671_v62, %v268_v61  ;;  %v1673_v3 = vld [vmem:[%s2108_s5 + $0x41] ss:$0 sm:$0xff]  ;;  %1418 = vst [vmem:[%s2115_s17 + $0xf4] sm:$0xf] %v1290_v59  ;;  %1419 = vst [vmem:[%s2115_s17 + $0xf8] sm:$0xf] %v1291_v60  ;;  %v1293_v4 = vadd.f32 %v1672_v1, %v269_v63 }
  0x92   : > { %v1294_v5 = vadd.f32 %v1673_v3, %v270_v2  ;;  %v271_v6 = vld [vmem:[%s2100_s24 + $0x108] sm:$0xf]  ;;  %v1674_v7 = vld [vmem:[%s2108_s5 + $0x42] ss:$0 sm:$0xff]  ;;  %v272_v8 = vld [vmem:[%s2100_s24 + $0x10c] sm:$0xf] }
  0x93   : > { %1420 = vst [vmem:[%s2115_s17 + $0xfc] sm:$0xf] %v1292_v0  ;;  %v1295_v9 = vadd.f32 %v1674_v7, %v271_v6  ;;  %v1675_v10 = vld [vmem:[%s2108_s5 + $0x43] ss:$0 sm:$0xff]  ;;  %v273_v11 = vld [vmem:[%s2100_s24 + $0x110] sm:$0xf] }
  0x94   : > { %v1676_v12 = vld [vmem:[%s2108_s5 + $0x44] ss:$0 sm:$0xff]  ;;  %1421 = vst [vmem:[%s2115_s17 + $0x100] sm:$0xf] %v1293_v4  ;;  %1422 = vst [vmem:[%s2115_s17 + $0x104] sm:$0xf] %v1294_v5  ;;  %v1296_v13 = vadd.f32 %v1675_v10, %v272_v8 }
  0x95   : > { %v1297_v14 = vadd.f32 %v1676_v12, %v273_v11  ;;  %v274_v15 = vld [vmem:[%s2100_s24 + $0x114] sm:$0xf]  ;;  %v1677_v16 = vld [vmem:[%s2108_s5 + $0x45] ss:$0 sm:$0xff]  ;;  %v275_v17 = vld [vmem:[%s2100_s24 + $0x118] sm:$0xf] }
  0x96   : > { %1423 = vst [vmem:[%s2115_s17 + $0x108] sm:$0xf] %v1295_v9  ;;  %v1298_v18 = vadd.f32 %v1677_v16, %v274_v15  ;;  %v1678_v19 = vld [vmem:[%s2108_s5 + $0x46] ss:$0 sm:$0xff]  ;;  %v276_v20 = vld [vmem:[%s2100_s24 + $0x11c] sm:$0xf] }
  0x97   : > { %v1679_v21 = vld [vmem:[%s2108_s5 + $0x47] ss:$0 sm:$0xff]  ;;  %1424 = vst [vmem:[%s2115_s17 + $0x10c] sm:$0xf] %v1296_v13  ;;  %1425 = vst [vmem:[%s2115_s17 + $0x110] sm:$0xf] %v1297_v14  ;;  %v1299_v22 = vadd.f32 %v1678_v19, %v275_v17 }
  0x98   : > { %v1300_v23 = vadd.f32 %v1679_v21, %v276_v20  ;;  %v277_v24 = vld [vmem:[%s2100_s24 + $0x120] sm:$0xf]  ;;  %v1680_v25 = vld [vmem:[%s2108_s5 + $0x48] ss:$0 sm:$0xff]  ;;  %v278_v26 = vld [vmem:[%s2100_s24 + $0x124] sm:$0xf] }
  0x99   : > { %1426 = vst [vmem:[%s2115_s17 + $0x114] sm:$0xf] %v1298_v18  ;;  %v1301_v27 = vadd.f32 %v1680_v25, %v277_v24  ;;  %v1681_v28 = vld [vmem:[%s2108_s5 + $0x49] ss:$0 sm:$0xff]  ;;  %v1682_v30 = vld [vmem:[%s2108_s5 + $0x4a] ss:$0 sm:$0xff] }
  0x9a   : > { %v279_v29 = vld [vmem:[%s2100_s24 + $0x128] sm:$0xf]  ;;  %1427 = vst [vmem:[%s2115_s17 + $0x118] sm:$0xf] %v1299_v22  ;;  %1428 = vst [vmem:[%s2115_s17 + $0x11c] sm:$0xf] %v1300_v23  ;;  %v1302_v31 = vadd.f32 %v1681_v28, %v278_v26 }
  0x9b   : > { %v1303_v32 = vadd.f32 %v1682_v30, %v279_v29  ;;  %v280_v33 = vld [vmem:[%s2100_s24 + $0x12c] sm:$0xf]  ;;  %v1683_v34 = vld [vmem:[%s2108_s5 + $0x4b] ss:$0 sm:$0xff]  ;;  %v281_v35 = vld [vmem:[%s2100_s24 + $0x130] sm:$0xf] }
  0x9c   : > { %1429 = vst [vmem:[%s2115_s17 + $0x120] sm:$0xf] %v1301_v27  ;;  %v1304_v36 = vadd.f32 %v1683_v34, %v280_v33  ;;  %v1684_v37 = vld [vmem:[%s2108_s5 + $0x4c] ss:$0 sm:$0xff]  ;;  %v282_v38 = vld [vmem:[%s2100_s24 + $0x134] sm:$0xf] }
  0x9d   : > { %v1685_v39 = vld [vmem:[%s2108_s5 + $0x4d] ss:$0 sm:$0xff]  ;;  %1430 = vst [vmem:[%s2115_s17 + $0x124] sm:$0xf] %v1302_v31  ;;  %1431 = vst [vmem:[%s2115_s17 + $0x128] sm:$0xf] %v1303_v32  ;;  %v1305_v40 = vadd.f32 %v1684_v37, %v281_v35 }
  0x9e   : > { %v1306_v41 = vadd.f32 %v1685_v39, %v282_v38  ;;  %v283_v42 = vld [vmem:[%s2100_s24 + $0x138] sm:$0xf]  ;;  %v1686_v43 = vld [vmem:[%s2108_s5 + $0x4e] ss:$0 sm:$0xff]  ;;  %v284_v44 = vld [vmem:[%s2100_s24 + $0x13c] sm:$0xf] }
  0x9f   : > { %1432 = vst [vmem:[%s2115_s17 + $0x12c] sm:$0xf] %v1304_v36  ;;  %v1307_v45 = vadd.f32 %v1686_v43, %v283_v42  ;;  %v1687_v46 = vld [vmem:[%s2108_s5 + $0x4f] ss:$0 sm:$0xff]  ;;  %v285_v47 = vld [vmem:[%s2100_s24 + $0x140] sm:$0xf] }
  0xa0   : > { %v1688_v48 = vld [vmem:[%s2108_s5 + $0x50] ss:$0 sm:$0xff]  ;;  %1433 = vst [vmem:[%s2115_s17 + $0x130] sm:$0xf] %v1305_v40  ;;  %1434 = vst [vmem:[%s2115_s17 + $0x134] sm:$0xf] %v1306_v41  ;;  %v1308_v49 = vadd.f32 %v1687_v46, %v284_v44 }
  0xa1   : > { %v1309_v50 = vadd.f32 %v1688_v48, %v285_v47  ;;  %v286_v51 = vld [vmem:[%s2100_s24 + $0x144] sm:$0xf]  ;;  %v1689_v52 = vld [vmem:[%s2108_s5 + $0x51] ss:$0 sm:$0xff]  ;;  %v287_v53 = vld [vmem:[%s2100_s24 + $0x148] sm:$0xf] }
  0xa2   : > { %1435 = vst [vmem:[%s2115_s17 + $0x138] sm:$0xf] %v1307_v45  ;;  %v1310_v54 = vadd.f32 %v1689_v52, %v286_v51  ;;  %v1690_v55 = vld [vmem:[%s2108_s5 + $0x52] ss:$0 sm:$0xff]  ;;  %v288_v56 = vld [vmem:[%s2100_s24 + $0x14c] sm:$0xf] }
  0xa3   : > { %v1691_v57 = vld [vmem:[%s2108_s5 + $0x53] ss:$0 sm:$0xff]  ;;  %1436 = vst [vmem:[%s2115_s17 + $0x13c] sm:$0xf] %v1308_v49  ;;  %1437 = vst [vmem:[%s2115_s17 + $0x140] sm:$0xf] %v1309_v50  ;;  %v1311_v58 = vadd.f32 %v1690_v55, %v287_v53 }
  0xa4   : > { %v1312_v59 = vadd.f32 %v1691_v57, %v288_v56  ;;  %v289_v60 = vld [vmem:[%s2100_s24 + $0x150] sm:$0xf]  ;;  %v1692_v61 = vld [vmem:[%s2108_s5 + $0x54] ss:$0 sm:$0xff]  ;;  %1438 = vst [vmem:[%s2115_s17 + $0x144] sm:$0xf] %v1310_v54 }
  0xa5   : > { %v290_v62 = vld [vmem:[%s2100_s24 + $0x154] sm:$0xf]  ;;  %v1313_v63 = vadd.f32 %v1692_v61, %v289_v60  ;;  %v291_v1 = vld [vmem:[%s2100_s24 + $0x158] sm:$0xf]  ;;  %1439 = vst [vmem:[%s2115_s17 + $0x148] sm:$0xf] %v1311_v58 }
  0xa6   : > { %v1693_v0 = vld [vmem:[%s2108_s5 + $0x55] ss:$0 sm:$0xff]  ;;  %v1694_v2 = vld [vmem:[%s2108_s5 + $0x56] ss:$0 sm:$0xff]  ;;  %1440 = vst [vmem:[%s2115_s17 + $0x14c] sm:$0xf] %v1312_v59 }
  0xa7   : > { %v1314_v3 = vadd.f32 %v1693_v0, %v290_v62  ;;  %v1315_v4 = vadd.f32 %v1694_v2, %v291_v1  ;;  %v292_v5 = vld [vmem:[%s2100_s24 + $0x15c] sm:$0xf]  ;;  %v1695_v6 = vld [vmem:[%s2108_s5 + $0x57] ss:$0 sm:$0xff]  ;;  %v293_v7 = vld [vmem:[%s2100_s24 + $0x160] sm:$0xf] }
  0xa8   : > { %1441 = vst [vmem:[%s2115_s17 + $0x150] sm:$0xf] %v1313_v63  ;;  %v1316_v8 = vadd.f32 %v1695_v6, %v292_v5  ;;  %v1696_v9 = vld [vmem:[%s2108_s5 + $0x58] ss:$0 sm:$0xff]  ;;  %v294_v10 = vld [vmem:[%s2100_s24 + $0x164] sm:$0xf] }
  0xa9   : > { %v1697_v11 = vld [vmem:[%s2108_s5 + $0x59] ss:$0 sm:$0xff]  ;;  %1442 = vst [vmem:[%s2115_s17 + $0x154] sm:$0xf] %v1314_v3  ;;  %1443 = vst [vmem:[%s2115_s17 + $0x158] sm:$0xf] %v1315_v4  ;;  %v1317_v12 = vadd.f32 %v1696_v9, %v293_v7 }
  0xaa   : > { %v1318_v13 = vadd.f32 %v1697_v11, %v294_v10  ;;  %v295_v14 = vld [vmem:[%s2100_s24 + $0x168] sm:$0xf]  ;;  %v1698_v15 = vld [vmem:[%s2108_s5 + $0x5a] ss:$0 sm:$0xff]  ;;  %v296_v16 = vld [vmem:[%s2100_s24 + $0x16c] sm:$0xf] }
  0xab   : > { %1444 = vst [vmem:[%s2115_s17 + $0x15c] sm:$0xf] %v1316_v8  ;;  %v1319_v17 = vadd.f32 %v1698_v15, %v295_v14  ;;  %v1699_v18 = vld [vmem:[%s2108_s5 + $0x5b] ss:$0 sm:$0xff]  ;;  %v297_v19 = vld [vmem:[%s2100_s24 + $0x170] sm:$0xf] }
  0xac   : > { %v1700_v20 = vld [vmem:[%s2108_s5 + $0x5c] ss:$0 sm:$0xff]  ;;  %1445 = vst [vmem:[%s2115_s17 + $0x160] sm:$0xf] %v1317_v12  ;;  %1446 = vst [vmem:[%s2115_s17 + $0x164] sm:$0xf] %v1318_v13  ;;  %v1320_v21 = vadd.f32 %v1699_v18, %v296_v16 }
  0xad   : > { %v1321_v22 = vadd.f32 %v1700_v20, %v297_v19  ;;  %v298_v23 = vld [vmem:[%s2100_s24 + $0x174] sm:$0xf]  ;;  %v1701_v24 = vld [vmem:[%s2108_s5 + $0x5d] ss:$0 sm:$0xff]  ;;  %v299_v25 = vld [vmem:[%s2100_s24 + $0x178] sm:$0xf] }
  0xae   : > { %1447 = vst [vmem:[%s2115_s17 + $0x168] sm:$0xf] %v1319_v17  ;;  %v1322_v26 = vadd.f32 %v1701_v24, %v298_v23  ;;  %v1702_v27 = vld [vmem:[%s2108_s5 + $0x5e] ss:$0 sm:$0xff]  ;;  %v1703_v29 = vld [vmem:[%s2108_s5 + $0x5f] ss:$0 sm:$0xff] }
  0xaf   : > { %v300_v28 = vld [vmem:[%s2100_s24 + $0x17c] sm:$0xf]  ;;  %1448 = vst [vmem:[%s2115_s17 + $0x16c] sm:$0xf] %v1320_v21  ;;  %1449 = vst [vmem:[%s2115_s17 + $0x170] sm:$0xf] %v1321_v22  ;;  %v1323_v30 = vadd.f32 %v1702_v27, %v299_v25 }
  0xb0   : > { %v1324_v31 = vadd.f32 %v1703_v29, %v300_v28  ;;  %v301_v32 = vld [vmem:[%s2100_s24 + $0x180] sm:$0xf]  ;;  %v302_v34 = vld [vmem:[%s2100_s24 + $0x184] sm:$0xf]  ;;  %1450 = vst [vmem:[%s2115_s17 + $0x174] sm:$0xf] %v1322_v26 }
  0xb1   : > { %v1704_v33 = vld [vmem:[%s2108_s5 + $0x60] ss:$0 sm:$0xff]  ;;  %v1705_v36 = vld [vmem:[%s2108_s5 + $0x61] ss:$0 sm:$0xff]  ;;  %v303_v37 = vld [vmem:[%s2100_s24 + $0x188] sm:$0xf] }
  0xb2   : > { %v1325_v35 = vadd.f32 %v1704_v33, %v301_v32  ;;  %v1706_v38 = vld [vmem:[%s2108_s5 + $0x62] ss:$0 sm:$0xff]  ;;  %1451 = vst [vmem:[%s2115_s17 + $0x178] sm:$0xf] %v1323_v30  ;;  %1452 = vst [vmem:[%s2115_s17 + $0x17c] sm:$0xf] %v1324_v31  ;;  %v1326_v39 = vadd.f32 %v1705_v36, %v302_v34 }
  0xb3   : > { %v1327_v40 = vadd.f32 %v1706_v38, %v303_v37  ;;  %v304_v41 = vld [vmem:[%s2100_s24 + $0x18c] sm:$0xf]  ;;  %v1707_v42 = vld [vmem:[%s2108_s5 + $0x63] ss:$0 sm:$0xff]  ;;  %v305_v43 = vld [vmem:[%s2100_s24 + $0x190] sm:$0xf] }
  0xb4   : > { %1453 = vst [vmem:[%s2115_s17 + $0x180] sm:$0xf] %v1325_v35  ;;  %v1328_v44 = vadd.f32 %v1707_v42, %v304_v41  ;;  %v1708_v45 = vld [vmem:[%s2108_s5 + $0x64] ss:$0 sm:$0xff]  ;;  %v306_v46 = vld [vmem:[%s2100_s24 + $0x194] sm:$0xf] }
  0xb5   : > { %v1709_v47 = vld [vmem:[%s2108_s5 + $0x65] ss:$0 sm:$0xff]  ;;  %1454 = vst [vmem:[%s2115_s17 + $0x184] sm:$0xf] %v1326_v39  ;;  %1455 = vst [vmem:[%s2115_s17 + $0x188] sm:$0xf] %v1327_v40  ;;  %v1329_v48 = vadd.f32 %v1708_v45, %v305_v43 }
  0xb6   : > { %v1330_v49 = vadd.f32 %v1709_v47, %v306_v46  ;;  %v307_v50 = vld [vmem:[%s2100_s24 + $0x198] sm:$0xf]  ;;  %v1710_v51 = vld [vmem:[%s2108_s5 + $0x66] ss:$0 sm:$0xff]  ;;  %v308_v52 = vld [vmem:[%s2100_s24 + $0x19c] sm:$0xf] }
  0xb7   : > { %1456 = vst [vmem:[%s2115_s17 + $0x18c] sm:$0xf] %v1328_v44  ;;  %v1331_v53 = vadd.f32 %v1710_v51, %v307_v50  ;;  %v1711_v54 = vld [vmem:[%s2108_s5 + $0x67] ss:$0 sm:$0xff]  ;;  %v309_v55 = vld [vmem:[%s2100_s24 + $0x1a0] sm:$0xf] }
  0xb8   : > { %v1712_v56 = vld [vmem:[%s2108_s5 + $0x68] ss:$0 sm:$0xff]  ;;  %1457 = vst [vmem:[%s2115_s17 + $0x190] sm:$0xf] %v1329_v48  ;;  %1458 = vst [vmem:[%s2115_s17 + $0x194] sm:$0xf] %v1330_v49  ;;  %v1332_v57 = vadd.f32 %v1711_v54, %v308_v52 }
  0xb9   : > { %v1333_v58 = vadd.f32 %v1712_v56, %v309_v55  ;;  %v310_v59 = vld [vmem:[%s2100_s24 + $0x1a4] sm:$0xf]  ;;  %v1713_v60 = vld [vmem:[%s2108_s5 + $0x69] ss:$0 sm:$0xff]  ;;  %1459 = vst [vmem:[%s2115_s17 + $0x198] sm:$0xf] %v1331_v53 }
  0xba   : > { %v311_v61 = vld [vmem:[%s2100_s24 + $0x1a8] sm:$0xf]  ;;  %v1334_v62 = vadd.f32 %v1713_v60, %v310_v59  ;;  %v312_v0 = vld [vmem:[%s2100_s24 + $0x1ac] sm:$0xf]  ;;  %1460 = vst [vmem:[%s2115_s17 + $0x19c] sm:$0xf] %v1332_v57 }
  0xbb   : > { %v1714_v63 = vld [vmem:[%s2108_s5 + $0x6a] ss:$0 sm:$0xff]  ;;  %v1715_v1 = vld [vmem:[%s2108_s5 + $0x6b] ss:$0 sm:$0xff]  ;;  %1461 = vst [vmem:[%s2115_s17 + $0x1a0] sm:$0xf] %v1333_v58 }
  0xbc   : > { %v1335_v2 = vadd.f32 %v1714_v63, %v311_v61  ;;  %v1336_v3 = vadd.f32 %v1715_v1, %v312_v0  ;;  %v313_v4 = vld [vmem:[%s2100_s24 + $0x1b0] sm:$0xf]  ;;  %v1716_v5 = vld [vmem:[%s2108_s5 + $0x6c] ss:$0 sm:$0xff]  ;;  %v314_v6 = vld [vmem:[%s2100_s24 + $0x1b4] sm:$0xf] }
  0xbd   : > { %1462 = vst [vmem:[%s2115_s17 + $0x1a4] sm:$0xf] %v1334_v62  ;;  %v1337_v7 = vadd.f32 %v1716_v5, %v313_v4  ;;  %v1717_v8 = vld [vmem:[%s2108_s5 + $0x6d] ss:$0 sm:$0xff]  ;;  %v315_v9 = vld [vmem:[%s2100_s24 + $0x1b8] sm:$0xf] }
  0xbe   : > { %v1718_v10 = vld [vmem:[%s2108_s5 + $0x6e] ss:$0 sm:$0xff]  ;;  %1463 = vst [vmem:[%s2115_s17 + $0x1a8] sm:$0xf] %v1335_v2  ;;  %1464 = vst [vmem:[%s2115_s17 + $0x1ac] sm:$0xf] %v1336_v3  ;;  %v1338_v11 = vadd.f32 %v1717_v8, %v314_v6 }
  0xbf   : > { %v1339_v12 = vadd.f32 %v1718_v10, %v315_v9  ;;  %v316_v13 = vld [vmem:[%s2100_s24 + $0x1bc] sm:$0xf]  ;;  %v1719_v14 = vld [vmem:[%s2108_s5 + $0x6f] ss:$0 sm:$0xff]  ;;  %v317_v15 = vld [vmem:[%s2100_s24 + $0x1c0] sm:$0xf] }
  0xc0   : > { %1465 = vst [vmem:[%s2115_s17 + $0x1b0] sm:$0xf] %v1337_v7  ;;  %v1340_v16 = vadd.f32 %v1719_v14, %v316_v13  ;;  %v1720_v17 = vld [vmem:[%s2108_s5 + $0x70] ss:$0 sm:$0xff]  ;;  %v318_v18 = vld [vmem:[%s2100_s24 + $0x1c4] sm:$0xf] }
  0xc1   : > { %v1721_v19 = vld [vmem:[%s2108_s5 + $0x71] ss:$0 sm:$0xff]  ;;  %1466 = vst [vmem:[%s2115_s17 + $0x1b4] sm:$0xf] %v1338_v11  ;;  %1467 = vst [vmem:[%s2115_s17 + $0x1b8] sm:$0xf] %v1339_v12  ;;  %v1341_v20 = vadd.f32 %v1720_v17, %v317_v15 }
  0xc2   : > { %v1342_v21 = vadd.f32 %v1721_v19, %v318_v18  ;;  %v319_v22 = vld [vmem:[%s2100_s24 + $0x1c8] sm:$0xf]  ;;  %v1722_v23 = vld [vmem:[%s2108_s5 + $0x72] ss:$0 sm:$0xff]  ;;  %v320_v24 = vld [vmem:[%s2100_s24 + $0x1cc] sm:$0xf] }
  0xc3   : > { %1468 = vst [vmem:[%s2115_s17 + $0x1bc] sm:$0xf] %v1340_v16  ;;  %v1343_v25 = vadd.f32 %v1722_v23, %v319_v22  ;;  %v1723_v26 = vld [vmem:[%s2108_s5 + $0x73] ss:$0 sm:$0xff]  ;;  %v1724_v28 = vld [vmem:[%s2108_s5 + $0x74] ss:$0 sm:$0xff] }
  0xc4   : > { %v321_v27 = vld [vmem:[%s2100_s24 + $0x1d0] sm:$0xf]  ;;  %1469 = vst [vmem:[%s2115_s17 + $0x1c0] sm:$0xf] %v1341_v20  ;;  %1470 = vst [vmem:[%s2115_s17 + $0x1c4] sm:$0xf] %v1342_v21  ;;  %v1344_v29 = vadd.f32 %v1723_v26, %v320_v24 }
  0xc5   : > { %v1345_v30 = vadd.f32 %v1724_v28, %v321_v27  ;;  %v322_v31 = vld [vmem:[%s2100_s24 + $0x1d4] sm:$0xf]  ;;  %v323_v33 = vld [vmem:[%s2100_s24 + $0x1d8] sm:$0xf]  ;;  %1471 = vst [vmem:[%s2115_s17 + $0x1c8] sm:$0xf] %v1343_v25 }
  0xc6   : > { %v1725_v32 = vld [vmem:[%s2108_s5 + $0x75] ss:$0 sm:$0xff]  ;;  %v1726_v35 = vld [vmem:[%s2108_s5 + $0x76] ss:$0 sm:$0xff]  ;;  %v324_v36 = vld [vmem:[%s2100_s24 + $0x1dc] sm:$0xf] }
  0xc7   : > { %v1346_v34 = vadd.f32 %v1725_v32, %v322_v31  ;;  %v1727_v37 = vld [vmem:[%s2108_s5 + $0x77] ss:$0 sm:$0xff]  ;;  %1472 = vst [vmem:[%s2115_s17 + $0x1cc] sm:$0xf] %v1344_v29  ;;  %1473 = vst [vmem:[%s2115_s17 + $0x1d0] sm:$0xf] %v1345_v30  ;;  %v1347_v38 = vadd.f32 %v1726_v35, %v323_v33 }
  0xc8   : > { %v1348_v39 = vadd.f32 %v1727_v37, %v324_v36  ;;  %v325_v40 = vld [vmem:[%s2100_s24 + $0x1e0] sm:$0xf]  ;;  %v1728_v41 = vld [vmem:[%s2108_s5 + $0x78] ss:$0 sm:$0xff]  ;;  %v326_v42 = vld [vmem:[%s2100_s24 + $0x1e4] sm:$0xf] }
  0xc9   : > { %1474 = vst [vmem:[%s2115_s17 + $0x1d4] sm:$0xf] %v1346_v34  ;;  %v1349_v43 = vadd.f32 %v1728_v41, %v325_v40  ;;  %v1729_v44 = vld [vmem:[%s2108_s5 + $0x79] ss:$0 sm:$0xff]  ;;  %v327_v45 = vld [vmem:[%s2100_s24 + $0x1e8] sm:$0xf] }
  0xca   : > { %v1730_v46 = vld [vmem:[%s2108_s5 + $0x7a] ss:$0 sm:$0xff]  ;;  %1475 = vst [vmem:[%s2115_s17 + $0x1d8] sm:$0xf] %v1347_v38  ;;  %1476 = vst [vmem:[%s2115_s17 + $0x1dc] sm:$0xf] %v1348_v39  ;;  %v1350_v47 = vadd.f32 %v1729_v44, %v326_v42 }
  0xcb   : > { %v1351_v48 = vadd.f32 %v1730_v46, %v327_v45  ;;  %v328_v49 = vld [vmem:[%s2100_s24 + $0x1ec] sm:$0xf]  ;;  %v1731_v50 = vld [vmem:[%s2108_s5 + $0x7b] ss:$0 sm:$0xff]  ;;  %v329_v51 = vld [vmem:[%s2100_s24 + $0x1f0] sm:$0xf] }
  0xcc   : > { %1477 = vst [vmem:[%s2115_s17 + $0x1e0] sm:$0xf] %v1349_v43  ;;  %v1352_v52 = vadd.f32 %v1731_v50, %v328_v49  ;;  %v1732_v53 = vld [vmem:[%s2108_s5 + $0x7c] ss:$0 sm:$0xff]  ;;  %v330_v54 = vld [vmem:[%s2100_s24 + $0x1f4] sm:$0xf] }
  0xcd   : > { %v1733_v55 = vld [vmem:[%s2108_s5 + $0x7d] ss:$0 sm:$0xff]  ;;  %1478 = vst [vmem:[%s2115_s17 + $0x1e4] sm:$0xf] %v1350_v47  ;;  %1479 = vst [vmem:[%s2115_s17 + $0x1e8] sm:$0xf] %v1351_v48  ;;  %v1353_v56 = vadd.f32 %v1732_v53, %v329_v51 }
  0xce   : > { %v1354_v57 = vadd.f32 %v1733_v55, %v330_v54  ;;  %v331_v58 = vld [vmem:[%s2100_s24 + $0x1f8] sm:$0xf]  ;;  %v1734_v59 = vld [vmem:[%s2108_s5 + $0x7e] ss:$0 sm:$0xff]  ;;  %1480 = vst [vmem:[%s2115_s17 + $0x1ec] sm:$0xf] %v1352_v52 }
  0xcf   : > { %v332_v60 = vld [vmem:[%s2100_s24 + $0x1fc] sm:$0xf]  ;;  %v1355_v61 = vadd.f32 %v1734_v59, %v331_v58  ;;  %1481 = vst [vmem:[%s2115_s17 + $0x1f0] sm:$0xf] %v1353_v56  ;;  %s1857_s29 = scalar_lea.vmem %s2507_s28, 8192  ;;  %p2565_p0 = scmp.ne.s32.totalorder %s2560_s21, 0 }
  0xd0   : > { %v1735_v62 = vld [vmem:[%s2108_s5 + $0x7f] ss:$0 sm:$0xff]  ;;  %1482 = vst [vmem:[%s2115_s17 + $0x1f4] sm:$0xf] %v1354_v57  ;;  %p1858_p12 = scmp.ne.s32.totalorder %s2507_s28, %s1857_s29  ;;  %s1933_s13 = smov [#allocation7]  }
  0xd1   : > { %v1356_v63 = vadd.f32 %v1735_v62, %v332_v60  ;;  %1483 = vst [vmem:[%s2115_s17 + $0x1f8] sm:$0xf] %v1355_v61  ;;  %s1861_s6 = sshll.u32 %s1933_s13, 4  ;;  %s1862_s6 = int_to_ptr.vmem [resolvable:$false] %s1861_s6 }
  0xd2   : > { %p1859_p10 = pnand %p1858_p12, %p2565_p0  ;;  %s1863_s7 = scalar_lea.vmem %s1862_s6, 16384 }
  0xd3   : > { %1484 = vst [vmem:[%s2115_s17 + $0x1fc] sm:$0xf] %v1356_v63  ;;  %p1864_p9 = scmp.lt.s32.totalorder %s2507_s28, %s1862_s6  ;;  %p1865_p13 = scmp.lt.s32.totalorder %s1863_s7, %s1857_s29 }
  0xd4   : > { %p1860_p7 = pneg %p1859_p10 }
  0xd5   : > { %p1866_p1 = por %p1865_p13, %p1864_p9 }
  0xd7   : > { %p1867_p3 = pnand %p1866_p1, %p1860_p7 }
  0xd9   : > { %1870 = shalt.err (!%p1867_p3)
}
  0xda   : > { %s1871_s14 = scalar_lea.hbm %s2503_s26, 8192  ;;  %s1875_s19 = scalar_lea.hbm %s2555_s2, 32768 }
  0xdb   : > { %p1872_p2 = scmp.ne.s32.totalorder %s2503_s26, %s1871_s14  ;;  %p1876_p5 = scmp.lt.s32.totalorder %s2503_s26, %s2555_s2 }
  0xdc   : > { %p1877_p8 = scmp.lt.s32.totalorder %s1875_s19, %s1871_s14 }
  0xdd   : > { %p1873_p4 = pnand %p1872_p2, %p2565_p0 }
  0xde   : > { %p1878_p6 = por %p1877_p8, %p1876_p5 }
  0xdf   : > { %p1874_p11 = pneg %p1873_p4 }
  0xe1   : > { %p1879_p12 = pnand %p1878_p6, %p1874_p11 }
  0xe3   : > { %1882 = shalt.err (!%p1879_p12)
}
  0xe4   : > { %s1934_s3 = smov 64   ;;  %s1935_s5 = smov 4  }
  0xe5   : > { %1748 = dma.vmem_to_hbm [thread:$0]  (%p2565_p0), %s2507_s28, 8192, %s2503_s26, %s1486_s27, %s1934_s3, %s1934_s3, %s1935_s5  }
  0xe6 PF: > { %p1762_p10 = scmp.ge.s32.totalorder %s1925_s12, 2  ;;  %s1514_s8 = sand.u32 1, %s1913_s9  }
  0xe7   : > { %p2566_p7 = scmp.ne.s32.totalorder %s2561_s22, 0  ;;  %s1515_s17 = scalar_lea.sflag [#allocation4], %s1514_s8 }
  0xe9   : > { %p1758_p9 = pnand %p1762_p10, %p2566_p7 }
  0xeb   : > { %p1759_p13 = pneg %p1758_p9 }
  0xed   : > { %1908 = dma.done.wait (%p1759_p13), %s1515_s17, 8192  }
  0xee   : > { %1910 = vsyncadd (%p1759_p13), %s1515_s17, 4294959104  ;;  %p18_p1 = scmp.ge.s32.totalorder %s1976_s15, 6   ;;  %s2567_s9 = smov %s1917_s10 }
  0xef   : > { %s2568_s10 = smov %s1921_s11  ;;  %s2569_s11 = smov %s1988_s18 }
  0xf0   : > { %s2570_s12 = smov %s1976_s15  ;;  %20 = sbr.rel (!%p18_p1) target bundleno = 7 (0x7), region = 86 }
  0xf5   :  { %1520 = vsyncpa [#allocation3], 1 }
  0xf6   :  { %1522 = vsyncpa [#allocation3 + $0x1], 1 }
  0xf7   :  { %1523 = vsyncpa [#allocation6], 1 }
  0xf8   :  { %1525 = vsyncpa [#allocation6 + $0x1], 1 }
  0xf9   :  { %1526 = vsyncpa [#allocation4], 1 }
  0xfa   :  { %1528 = vsyncpa [#allocation4 + $0x1], 1 }

</bundles_post_ra>
